<compile_context>
chip_gen: v6e
topology: v6e:2x2x1
jax: 0.10.0
libtpu: 0.0.40
codegen_flags: <defaults>
</compile_context>

<pallas_src>
import functools

import jax
import jax.numpy as jnp
from jax.experimental import pallas as pl
from jax.experimental.pallas import tpu as pltpu


def _round_up(x, m):
    return (x + m - 1) // m * m


def _prior_net_kernel(x_ref, w1_ref, b1_ref, w2_ref, out_ref, *, latent, group):
    x = x_ref[...]                                            # [TB, C*R]

    # Hidden layer (all C folded rows at once): one MXU matmul, VPU bias+ReLU.
    h = jnp.dot(x, w1_ref[...], preferred_element_type=jnp.float32)
    h = jnp.maximum(h + b1_ref[...], 0.0)                     # [TB, Hw]
    # Per group, lane P of b1 is 1.0 -> survives ReLU -> the matching row of w2
    # injects both head biases (no separate bias inputs / adds).

    # Fused heads: one MXU matmul producing C groups of [mu | sigma_raw] lanes.
    y = jnp.dot(h, w2_ref[...], preferred_element_type=jnp.float32)  # [TB, 128]

    # Numerically stable softplus: max(x,0) + log1p(exp(-|x|))  (EUP/VPU slack).
    sp = jnp.maximum(y, 0.0) + jnp.log1p(jnp.exp(-jnp.abs(y)))
    col = jax.lax.broadcasted_iota(jnp.int32, y.shape, dimension=1)
    lane_in_group = col % group
    # Within each group: lanes [0, L) are mu (identity), lanes [L, 2L) sigma.
    out_ref[...] = jnp.where(lane_in_group < latent, y, sp + 1e-4)


def _choose_block(b_fold, requested=None):
    """Pick the folded-row block size and grid length."""
    if requested is not None:
        bb = max(8, _round_up(min(int(requested), 2048), 8))
    elif b_fold <= 8:
        bb = 8
    else:
        # Biggest block that still leaves >= 2 parallel steps (v7x has 2 TCs),
        # capped at 2048 folded rows so a huge batch stays well under the
        # scoped VMEM limit (16 MiB v5e / 32 MiB v6e/v7x).
        bb = min(2048, _round_up(pl.cdiv(b_fold, 2), 8))
    grid = pl.cdiv(b_fold, bb)
    return bb, grid


def prior_net_forward(rnn_state, packed, latent_code_size, *, block_rows=None):
    """rnn_state: [B, num_rnn_units] f32.  Returns (mu, sigma): [B, latent]."""
    w1, b1, w2 = packed["w1"], packed["b1"], packed["w2"]
    B, R = rnn_state.shape
    L = latent_code_size
    CR, Hw = w1.shape
    out_w = w2.shape[1]
    assert CR % R == 0 and out_w % (CR // R) == 0
    C = CR // R                # batch rows folded per kernel row
    og = out_w // C            # lanes per folded group (== 2L when compacted)

    b_fold = pl.cdiv(B, C)
    bb, grid = _choose_block(b_fold, block_rows)
    b_fold_pad = bb * grid

    pad = b_fold_pad * C - B
    x = rnn_state if pad == 0 else jnp.pad(rnn_state, ((0, pad), (0, 0)))
    x_packed = x.reshape(b_fold_pad, CR)          # contiguous -> free reshape

    kernel = functools.partial(_prior_net_kernel, latent=L, group=og)

    cost = pl.CostEstimate(
        flops=2 * b_fold_pad * (CR * Hw + Hw * out_w),
        # stable softplus issues exp + log1p over every output lane
        transcendentals=2 * b_fold_pad * out_w,
        bytes_accessed=4 * (b_fold_pad * CR + CR * Hw + Hw + Hw * out_w
                            + b_fold_pad * out_w),
    )

    out = pl.pallas_call(
        kernel,
        out_shape=jax.ShapeDtypeStruct((b_fold_pad, out_w), jnp.float32),
        grid=(grid,),
        in_specs=[
            pl.BlockSpec((bb, CR), lambda i: (i, 0)),     # folded activations
            pl.BlockSpec((CR, Hw), lambda i: (0, 0)),     # VMEM-resident weights
            pl.BlockSpec((1, Hw), lambda i: (0, 0)),      # VMEM-resident bias row
            pl.BlockSpec((Hw, out_w), lambda i: (0, 0)),  # VMEM-resident heads
        ],
        out_specs=pl.BlockSpec((bb, out_w), lambda i: (i, 0)),
        compiler_params=pltpu.CompilerParams(
            dimension_semantics=("parallel",)),
        cost_estimate=cost,
    )(x_packed, w1, b1, w2)

    # Unfold: [B_fold_pad, C*og] -> [B_fold_pad*C, og] is a contiguous reshape.
    flat = out.reshape(b_fold_pad * C, og)[:B]
    mu = flat[:, :L]
    sigma = flat[:, L:2 * L]
    return mu, sigma


def init_params(key, num_rnn_units, prior_net_dim, latent_code_size):
    """Synthetic params matching PyTorch Linear, stored pre-transposed [in, out]."""
    ks = jax.random.split(key, 6)
    wh = jax.random.normal(ks[0], (num_rnn_units, prior_net_dim), jnp.float32) * 0.1
    bh = jax.random.normal(ks[1], (prior_net_dim,), jnp.float32) * 0.1
    wmu = jax.random.normal(ks[2], (prior_net_dim, latent_code_size), jnp.float32) * 0.1
    bmu = jax.random.normal(ks[3], (latent_code_size,), jnp.float32) * 0.1
    ws = jax.random.normal(ks[4], (prior_net_dim, latent_code_size), jnp.float32) * 0.1
    bs = jax.random.normal(ks[5], (latent_code_size,), jnp.float32) * 0.1
    return dict(wh=wh, bh=bh, wmu=wmu, bmu=bmu, ws=ws, bs=bs)


def pack_params(p):
    """One-time packing into the batch-folded, block-diagonal kernel layout."""
    wh, bh, wmu, bmu, ws, bs = p["wh"], p["bh"], p["wmu"], p["bmu"], p["ws"], p["bs"]
    R, P = wh.shape
    L = wmu.shape[1]
    O = 2 * L
    if O <= 128 and 128 % O == 0:
        C, out_w, og = 128 // O, 128, O          # fully compacted output
    else:
        C, out_w, og = 1, _round_up(O, 128), _round_up(O, 128)   # fallback

    # Per-group hidden width (P real lanes + 1 constant bias-feed lane), bumped
    # so the total hidden width is a lane-dense multiple of 128.
    Hg = _round_up(P + 1, 8)
    while (C * Hg) % 128:
        Hg += 8
    Hw = C * Hg

    w_head = jnp.concatenate([wmu, ws], axis=1)   # (P, 2L)
    b_head = jnp.concatenate([bmu, bs], axis=0)   # (2L,)

    w1 = jnp.zeros((C * R, Hw), jnp.float32)
    b1 = jnp.zeros((1, Hw), jnp.float32)
    w2 = jnp.zeros((Hw, out_w), jnp.float32)
    for j in range(C):
        w1 = w1.at[j * R:(j + 1) * R, j * Hg:j * Hg + P].set(wh)
        b1 = b1.at[0, j * Hg:j * Hg + P].set(bh)
        b1 = b1.at[0, j * Hg + P].set(1.0)        # constant lane feeding head biases
        w2 = w2.at[j * Hg:j * Hg + P, j * og:j * og + O].set(w_head)
        w2 = w2.at[j * Hg + P, j * og:j * og + O].set(b_head)
    return dict(w1=w1, b1=b1, w2=w2)


def _reference(rnn_state, p):
    h = jax.nn.relu(rnn_state @ p["wh"] + p["bh"])
    mu = h @ p["wmu"] + p["bmu"]
    sigma = jax.nn.softplus(h @ p["ws"] + p["bs"]) + 1e-4
    return mu, sigma


if __name__ == "__main__":
    # Shapes implied by the module: num_rnn_units=32, prior_net_dim=32,
    # latent_code_size=16.
    NUM_RNN_UNITS, PRIOR_NET_DIM, LATENT = 32, 32, 16

    key = jax.random.PRNGKey(0)
    k1, k2, k3, kp = jax.random.split(key, 4)
    params = init_params(kp, NUM_RNN_UNITS, PRIOR_NET_DIM, LATENT)
    packed = pack_params(params)

    def check(x):
        mu, sig = prior_net_forward(x, packed, LATENT)
        jax.block_until_ready((mu, sig))
        with jax.default_matmul_precision("float32"):
            mu_r, sig_r = _reference(x, params)
        assert mu.shape == (x.shape[0], LATENT) and sig.shape == (x.shape[0], LATENT)
        assert jnp.allclose(mu, mu_r, atol=2e-3, rtol=2e-3)
        assert jnp.allclose(sig, sig_r, atol=2e-3, rtol=2e-3)
        assert bool(jnp.all(sig > 0.0))
        assert bool(jnp.all(jnp.isfinite(mu)))

    # Case 1: tiny per-timestep batch (single grid step, padded to one tile).
    check(jax.random.normal(k1, (8, NUM_RNN_UNITS), jnp.float32))
    # Case 2: timestep-flattened batch -> 2 parallel grid steps (v7x megacore),
    # VMEM-resident weights across steps.
    check(jax.random.normal(k2, (256, NUM_RNN_UNITS), jnp.float32))
    # Case 3: awkward batch size exercising the hardened cdiv/padded path.
    check(jax.random.normal(k3, (50, NUM_RNN_UNITS), jnp.float32))

    print("KERNEL_OK")
</pallas_src>

<mosaic_0001>
module attributes {stable_mosaic.version = 11 : i64} {
  func.func @_prior_net_kernel(%arg0: i32, %arg1: memref<8x128xf32, #tpu.memory_space<vmem>>, %arg2: memref<128x256xf32, #tpu.memory_space<vmem>>, %arg3: memref<1x256xf32, #tpu.memory_space<vmem>>, %arg4: memref<256x128xf32, #tpu.memory_space<vmem>>, %arg5: memref<8x128xf32, #tpu.memory_space<vmem>>) attributes {dimension_semantics = [#tpu.dimension_semantics<parallel>], iteration_bounds = array<i64: 1>, scalar_prefetch = 0 : i64, scratch_operands = 0 : i64, tpu.core_type = #tpu.core_type<tc>, window_params = [{transform_indices = @transform_0, window_bounds = array<i64: 8, 128>}, {pipeline_mode = #tpu.pipeline_mode<synchronous>, transform_indices = @transform_1, window_bounds = array<i64: 128, 256>}, {pipeline_mode = #tpu.pipeline_mode<synchronous>, transform_indices = @transform_2, window_bounds = array<i64: 1, 256>}, {pipeline_mode = #tpu.pipeline_mode<synchronous>, transform_indices = @transform_3, window_bounds = array<i64: 256, 128>}, {transform_indices = @transform_4, window_bounds = array<i64: 8, 128>}]} {
    %c0 = arith.constant 0 : index
    %c0_0 = arith.constant 0 : index
    %0 = vector.load %arg1[%c0, %c0_0] : memref<8x128xf32, #tpu.memory_space<vmem>>, vector<8x128xf32>
    %c0_1 = arith.constant 0 : index
    %c0_2 = arith.constant 0 : index
    %1 = vector.load %arg2[%c0_1, %c0_2] : memref<128x256xf32, #tpu.memory_space<vmem>>, vector<128x256xf32>
    %cst = arith.constant dense<0.000000e+00> : vector<8x256xf32>
    %2 = tpu.matmul %0, %1, %cst {dimension_numbers = #tpu.dot_dimension_numbers<[1], [0], [0], [1], [0, 0, 1, 1], [], []>} : vector<8x128xf32>, vector<128x256xf32>, vector<8x256xf32> -> vector<8x256xf32>
    %c0_3 = arith.constant 0 : index
    %c0_4 = arith.constant 0 : index
    %3 = vector.load %arg3[%c0_3, %c0_4] : memref<1x256xf32, #tpu.memory_space<vmem>>, vector<1x256xf32>
    %4 = vector.broadcast %3 : vector<1x256xf32> to vector<8x256xf32>
    %5 = arith.addf %2, %4 : vector<8x256xf32>
    %cst_5 = arith.constant 0.000000e+00 : f32
    %6 = vector.broadcast %cst_5 : f32 to vector<8x256xf32>
    %7 = arith.maximumf %5, %6 : vector<8x256xf32>
    %c0_6 = arith.constant 0 : index
    %c0_7 = arith.constant 0 : index
    %8 = vector.load %arg4[%c0_6, %c0_7] : memref<256x128xf32, #tpu.memory_space<vmem>>, vector<256x128xf32>
    %cst_8 = arith.constant dense<0.000000e+00> : vector<8x128xf32>
    %9 = tpu.matmul %7, %8, %cst_8 {dimension_numbers = #tpu.dot_dimension_numbers<[1], [0], [0], [1], [0, 0, 1, 1], [], []>} : vector<8x256xf32>, vector<256x128xf32>, vector<8x128xf32> -> vector<8x128xf32>
    %cst_9 = arith.constant 0.000000e+00 : f32
    %10 = vector.broadcast %cst_9 : f32 to vector<8x128xf32>
    %11 = arith.maximumf %9, %10 : vector<8x128xf32>
    %12 = math.absf %9 : vector<8x128xf32>
    %cst_10 = arith.constant 0.000000e+00 : f32
    %13 = vector.broadcast %cst_10 : f32 to vector<8x128xf32>
    %14 = arith.subf %13, %12 : vector<8x128xf32>
    %15 = math.exp %14 : vector<8x128xf32>
    %16 = math.log1p %15 : vector<8x128xf32>
    %17 = arith.addf %11, %16 : vector<8x128xf32>
    %18 = tpu.iota {dimensions = array<i32: 1>} : vector<8x128xi32>
    %c32_i32 = arith.constant 32 : i32
    %c0_i32 = arith.constant 0 : i32
    %19 = arith.cmpi eq, %c32_i32, %c0_i32 : i32
    %c1_i32 = arith.constant 1 : i32
    %20 = arith.select %19, %c1_i32, %c32_i32 : i32
    %21 = vector.broadcast %20 : i32 to vector<8x128xi32>
    %22 = arith.remsi %18, %21 : vector<8x128xi32>
    %c0_i32_11 = arith.constant 0 : i32
    %23 = vector.broadcast %c0_i32_11 : i32 to vector<8x128xi32>
    %24 = arith.cmpi ne, %22, %23 : vector<8x128xi32>
    %c0_i32_12 = arith.constant 0 : i32
    %25 = vector.broadcast %c0_i32_12 : i32 to vector<8x128xi32>
    %26 = arith.cmpi slt, %22, %25 : vector<8x128xi32>
    %c0_i32_13 = arith.constant 0 : i32
    %27 = arith.cmpi slt, %20, %c0_i32_13 : i32
    %28 = vector.broadcast %27 : i1 to vector<8x128xi1>
    %29 = vector.broadcast %28 : vector<8x128xi1> to vector<8x128xi1>
    %30 = arith.xori %26, %29 : vector<8x128xi1>
    %31 = arith.andi %30, %24 : vector<8x128xi1>
    %32 = vector.broadcast %20 : i32 to vector<8x128xi32>
    %33 = arith.addi %22, %32 : vector<8x128xi32>
    %34 = arith.select %31, %33, %22 : vector<8x128xi1>, vector<8x128xi32>
    %c16_i32 = arith.constant 16 : i32
    %35 = vector.broadcast %c16_i32 : i32 to vector<8x128xi32>
    %36 = arith.cmpi slt, %34, %35 : vector<8x128xi32>
    %cst_14 = arith.constant 9.99999974E-5 : f32
    %37 = vector.broadcast %cst_14 : f32 to vector<8x128xf32>
    %38 = arith.addf %17, %37 : vector<8x128xf32>
    %39 = arith.select %36, %9, %38 : vector<8x128xi1>, vector<8x128xf32>
    %c0_15 = arith.constant 0 : index
    %c0_16 = arith.constant 0 : index
    %40 = vector.load %arg5[%c0_15, %c0_16] : memref<8x128xf32, #tpu.memory_space<vmem>>, vector<8x128xf32>
    tpu.vector_store %arg5[%c0_15, %c0_16], %39 {strides = array<i32>} : memref<8x128xf32, #tpu.memory_space<vmem>>, vector<8x128xf32>,
    return
  }
  func.func @transform_0(%arg0: i32) -> (i32, i32) {
    %c0_i32 = arith.constant 0 : i32
    %c0_i32_0 = arith.constant 0 : i32
    return %arg0, %c0_i32 : i32, i32
  }
  func.func @transform_1(%arg0: i32) -> (i32, i32) {
    %c0_i32 = arith.constant 0 : i32
    %c0_i32_0 = arith.constant 0 : i32
    %c0_i32_1 = arith.constant 0 : i32
    return %c0_i32, %c0_i32_0 : i32, i32
  }
  func.func @transform_2(%arg0: i32) -> (i32, i32) {
    %c0_i32 = arith.constant 0 : i32
    %c0_i32_0 = arith.constant 0 : i32
    %c0_i32_1 = arith.constant 0 : i32
    return %c0_i32, %c0_i32_0 : i32, i32
  }
  func.func @transform_3(%arg0: i32) -> (i32, i32) {
    %c0_i32 = arith.constant 0 : i32
    %c0_i32_0 = arith.constant 0 : i32
    %c0_i32_1 = arith.constant 0 : i32
    return %c0_i32, %c0_i32_0 : i32, i32
  }
  func.func @transform_4(%arg0: i32) -> (i32, i32) {
    %c0_i32 = arith.constant 0 : i32
    %c0_i32_0 = arith.constant 0 : i32
    return %arg0, %c0_i32 : i32, i32
  }
}

</mosaic_0001>

<bundles_post_ra>
// kernel: tpu_custom_call.1
= control target key start
LH: loop header
LB: loop body
LE: loop exit
PB: predicated region body
PF: predicated region fallthrough
CT: control target
= control target key end

     0   :  { %9 = vsyncpa [#allocation3], 0  ;;  %s509_s0 = inlined_call_operand.hbm [shape: f32[8,128], index: 0, kind: input, shape index: {}]   ;;  %s510_s1 = inlined_call_operand.hbm [shape: f32[128,256], index: 1, kind: input, shape index: {}]   ;;  %s511_s2 = inlined_call_operand.vmem [shape: f32[1,256], index: 2, kind: input, shape index: {}]   ;;  %s512_s3 = inlined_call_operand.hbm [shape: f32[256,128], index: 3, kind: input, shape index: {}]   ;;  %s513_s4 = inlined_call_operand.hbm [shape: f32[8,128], index: 4, kind: output, shape index: {}]  }
   0x1   :  { %10 = vsyncpa [#allocation6], 0 }
   0x2   :  { %11 = vsyncpa [#allocation4], 0  ;;  %s460_s15 = smov [#allocation5]  }
   0x3   :  { %s27_s16 = sshll.u32 %s460_s15, 4  ;;  %s28_s16 = int_to_ptr.vmem [resolvable:$true] %s27_s16 }
   0x4   :  { %s382_s17 = scalar_lea.vmem %s28_s16, 4096  ;;  %p387_p1 = scmp.lt.s32.totalorder %s28_s16, %s28_s16 }
   0x5   :  { %p383_p0 = scmp.ne.s32.totalorder %s28_s16, %s382_s17  ;;  %p388_p2 = scmp.lt.s32.totalorder %s382_s17, %s382_s17 }
   0x7   :  { %p389_p3 = por %p388_p2, %p387_p1 }
   0x9   :  { %p390_p4 = pnand %p389_p3, %p383_p0 }
   0xb   :  { %393 = shalt.err (!%p390_p4)
}
   0xc   :  { %s461_s18 = smov 256   ;;  %s462_s19 = smov 16  }
   0xd   :  { %33 = dma.hbm_to_vmem [thread:$0]  %s510_s1, 4096, %s28_s16, [#allocation6], %s461_s18, %s461_s18, %s462_s19  }
   0xe   :  { %s463_s22 = smov [#allocation2]   ;;  %s464_s24 = smov [#allocation7]  }
   0xf   :  { %s18_s23 = sshll.u32 %s463_s22, 4  ;;  %s41_s25 = sshll.u32 %s464_s24, 4  ;;  %s19_s23 = int_to_ptr.vmem [resolvable:$true] %s18_s23  ;;  %s42_s25 = int_to_ptr.vmem [resolvable:$true] %s41_s25 }
  0x10   :  { %s402_s26 = scalar_lea.vmem %s19_s23, 128  ;;  %p407_p6 = scmp.lt.s32.totalorder %s19_s23, %s19_s23 }
  0x11   :  { %p403_p5 = scmp.ne.s32.totalorder %s19_s23, %s402_s26  ;;  %p408_p7 = scmp.lt.s32.totalorder %s402_s26, %s402_s26 }
  0x13   :  { %p409_p8 = por %p408_p7, %p407_p6 }
  0x15   :  { %p410_p9 = pnand %p409_p8, %p403_p5 }
  0x17   :  { %413 = shalt.err (!%p410_p9)
}
  0x18   :  { %21 = dma.hbm_to_vmem [thread:$0]  %s509_s0, 128, %s19_s23, [#allocation3]  }
  0x19   :  { %s422_s29 = scalar_lea.vmem %s42_s25, 4096  ;;  %p427_p11 = scmp.lt.s32.totalorder %s42_s25, %s42_s25 }
  0x1a   :  { %p423_p10 = scmp.ne.s32.totalorder %s42_s25, %s422_s29  ;;  %p428_p12 = scmp.lt.s32.totalorder %s422_s29, %s422_s29 }
  0x1c   :  { %p429_p13 = por %p428_p12, %p427_p11 }
  0x1e   :  { %p430_p0 = pnand %p429_p13, %p423_p10 }
  0x20   :  { %433 = shalt.err (!%p430_p0)
}
  0x21   :  { %s465_s1 = smov 128   ;;  %s466_s30 = smov 8  }
  0x22   :  { %47 = dma.hbm_to_vmem [thread:$0]  %s512_s3, 4096, %s42_s25, [#allocation6], %s465_s1, %s465_s1, %s466_s30  }
  0x23   :  { %454 = dma.done.wait [#allocation3], 128  }
  0x24   :  { %455 = vsyncadd [#allocation3], 4294967168 }
  0x25   :  { %456 = dma.done.wait [#allocation6], 8192  }
  0x26   :  { %457 = vsyncadd [#allocation6], 4294959104  ;;  %v467_v0 = vmov 0.0   ;;  %v89_v1 = vld [vmem:[#allocation5 + $0xf8] sm:$0xff]  ;;  %v88_v2 = vld [vmem:[#allocation5 + $0xf0] sm:$0xff] }
  0x27   :  { %166 = vmatprep.mubr.f32.mxu0 %v467_v0  ;;  %v87_v3 = vld [vmem:[#allocation5 + $0xe8] sm:$0xff]  ;;  %102 = vmatprep.subr.mxu0 %v89_v1  ;;  %v86_v4 = vld [vmem:[#allocation5 + $0xe0] sm:$0xff]  ;;  %v85_v5 = vld [vmem:[#allocation5 + $0xd8] sm:$0xff] }
  0x28   :  { %103 = vmatpush1.msra.mxu0 %v88_v2  ;;  %v84_v6 = vld [vmem:[#allocation5 + $0xd0] sm:$0xff]  ;;  %v83_v7 = vld [vmem:[#allocation5 + $0xc8] sm:$0xff]  ;;  %v82_v8 = vld [vmem:[#allocation5 + $0xc0] sm:$0xff]  ;;  %v92_v2 = vlaneseq }
  0x29   :  { %104 = vmatprep.subr.mxu0 %v87_v3  ;;  %v81_v9 = vld [vmem:[#allocation5 + $0xb8] sm:$0xff]  ;;  %v80_v10 = vld [vmem:[#allocation5 + $0xb0] sm:$0xff]  ;;  %v79_v11 = vld [vmem:[#allocation5 + $0xa8] sm:$0xff] }
  0x2a   :  { %105 = vmatpush1.msra.mxu0 %v86_v4  ;;  %v78_v12 = vld [vmem:[#allocation5 + $0xa0] sm:$0xff]  ;;  %v77_v13 = vld [vmem:[#allocation5 + $0x98] sm:$0xff]  ;;  %v76_v14 = vld [vmem:[#allocation5 + $0x90] sm:$0xff]  ;;  %v93_v3 = vshrl.u32 %v92_v2, 7 }
  0x2b   :  { %106 = vmatprep.subr.mxu0 %v85_v5  ;;  %v206_v15 = vld [vmem:[#allocation7 + $0xf8] sm:$0xff]  ;;  %v205_v17 = vld [vmem:[#allocation7 + $0xf0] sm:$0xff]  ;;  %v75_v18 = vld [vmem:[#allocation5 + $0x88] sm:$0xff] }
  0x2c   :  { %107 = vmatpush1.msra.mxu0 %v84_v6  ;;  %v190_v16 = vld [vmem:[#allocation7 + $0x78] sm:$0xff]  ;;  %326 = vmatprep.subr.mxu1 %v206_v15  ;;  %v189_v19 = vld [vmem:[#allocation7 + $0x70] sm:$0xff]  ;;  %v74_v20 = vld [vmem:[#allocation5 + $0x80] sm:$0xff]  ;;  %v94_v4 = vsub.s32 0, %v93_v3  ;;  %v98_v6 = vsub.s32 1, %v93_v3 }
  0x2d   :  { %108 = vmatprep.subr.mxu0 %v83_v7  ;;  %327 = vmatpush3.msra.mxu1 %v190_v16  ;;  %v204_v21 = vld [vmem:[#allocation7 + $0xe8] sm:$0xff]  ;;  %v73_v22 = vld [vmem:[#allocation5 + $0x78] sm:$0xff]  ;;  %v72_v24 = vld [vmem:[#allocation5 + $0x70] sm:$0xff] }
  0x2e   :  { %109 = vmatpush1.msra.mxu0 %v82_v8  ;;  %328 = vmatprep.subr.mxu1 %v205_v17  ;;  %v188_v23 = vld [vmem:[#allocation7 + $0x68] sm:$0xff]  ;;  %v203_v25 = vld [vmem:[#allocation7 + $0xe0] sm:$0xff]  ;;  %v202_v29 = vld [vmem:[#allocation7 + $0xd8] sm:$0xff] }
  0x2f   :  { %110 = vmatprep.subr.mxu0 %v81_v9  ;;  %329 = vmatpush3.msra.mxu1 %v189_v19  ;;  %v71_v26 = vld [vmem:[#allocation5 + $0x68] sm:$0xff]  ;;  %v187_v27 = vld [vmem:[#allocation7 + $0x60] sm:$0xff]  ;;  %v69_v30 = vld [vmem:[#allocation5 + $0x58] sm:$0xff] }
  0x30   :  { %111 = vmatpush1.msra.mxu0 %v80_v10  ;;  %330 = vmatprep.subr.mxu1 %v204_v21  ;;  %v70_v28 = vld [vmem:[#allocation5 + $0x60] sm:$0xff]  ;;  %v186_v31 = vld [vmem:[#allocation7 + $0x58] sm:$0xff]  ;;  %v68_v32 = vld [vmem:[#allocation5 + $0x50] sm:$0xff] }
  0x31   :  { %112 = vmatprep.subr.mxu0 %v79_v11  ;;  %331 = vmatpush3.msra.mxu1 %v188_v23  ;;  %v201_v33 = vld [vmem:[#allocation7 + $0xd0] sm:$0xff]  ;;  %v67_v34 = vld [vmem:[#allocation5 + $0x48] sm:$0xff]  ;;  %v66_v36 = vld [vmem:[#allocation5 + $0x40] sm:$0xff] }
  0x32   :  { %113 = vmatpush1.msra.mxu0 %v78_v12  ;;  %332 = vmatprep.subr.mxu1 %v203_v25  ;;  %v185_v35 = vld [vmem:[#allocation7 + $0x50] sm:$0xff]  ;;  %v200_v37 = vld [vmem:[#allocation7 + $0xc8] sm:$0xff]  ;;  %v65_v38 = vld [vmem:[#allocation5 + $0x38] sm:$0xff]  ;;  %v293_v25 = vand.u32 127, %v92_v2 }
  0x33   :  { %114 = vmatprep.subr.mxu0 %v77_v13  ;;  %333 = vmatpush3.msra.mxu1 %v187_v27  ;;  %v184_v39 = vld [vmem:[#allocation7 + $0x48] sm:$0xff]  ;;  %v64_v40 = vld [vmem:[#allocation5 + $0x30] sm:$0xff]  ;;  %v199_v41 = vld [vmem:[#allocation7 + $0xc0] sm:$0xff] }
  0x34   :  { %115 = vmatpush1.msra.mxu0 %v76_v14  ;;  %334 = vmatprep.subr.mxu1 %v202_v29  ;;  %v63_v42 = vld [vmem:[#allocation5 + $0x28] sm:$0xff]  ;;  %v183_v43 = vld [vmem:[#allocation7 + $0x40] sm:$0xff]  ;;  %v198_v45 = vld [vmem:[#allocation7 + $0xb8] sm:$0xff] }
  0x35   :  { %116 = vmatprep.subr.mxu0 %v75_v18  ;;  %335 = vmatpush3.msra.mxu1 %v186_v31  ;;  %v62_v44 = vld [vmem:[#allocation5 + $0x20] sm:$0xff]  ;;  %v61_v46 = vld [vmem:[#allocation5 + $0x18] sm:$0xff]  ;;  %v60_v48 = vld [vmem:[#allocation5 + $0x10] sm:$0xff] }
  0x36   :  { %117 = vmatpush1.msra.mxu0 %v74_v20  ;;  %336 = vmatprep.subr.mxu1 %v201_v33  ;;  %v182_v47 = vld [vmem:[#allocation7 + $0x38] sm:$0xff]  ;;  %v197_v49 = vld [vmem:[#allocation7 + $0xb0] sm:$0xff]  ;;  %v59_v50 = vld [vmem:[#allocation5 + $0x8] sm:$0xff] }
  0x37   :  { %118 = vmatprep.subr.mxu0 %v73_v22  ;;  %337 = vmatpush3.msra.mxu1 %v185_v35  ;;  %v181_v51 = vld [vmem:[#allocation7 + $0x30] sm:$0xff]  ;;  %v58_v52 = vld [vmem:[#allocation5] sm:$0xff]  ;;  %v196_v53 = vld [vmem:[#allocation7 + $0xa8] sm:$0xff] }
  0x38   :  { %119 = vmatpush1.msra.mxu0 %v72_v24  ;;  %338 = vmatprep.subr.mxu1 %v200_v37  ;;  %v57_v54 = vld [vmem:[#allocation2] sm:$0xff]  ;;  %v180_v55 = vld [vmem:[#allocation7 + $0x28] sm:$0xff]  ;;  %v195_v56 = vld [vmem:[#allocation7 + $0xa0] sm:$0xff] }
  0x39   :  { %120 = vmatprep.subr.mxu0 %v71_v26  ;;  %339 = vmatpush3.msra.mxu1 %v184_v39  ;;  %v179_v57 = vld [vmem:[#allocation7 + $0x20] sm:$0xff]  ;;  %v194_v58 = vld [vmem:[#allocation7 + $0x98] sm:$0xff]  ;;  %v193_v60 = vld [vmem:[#allocation7 + $0x90] sm:$0xff] }
  0x3a   :  { %121 = vmatpush1.msra.mxu0 %v70_v28  ;;  %340 = vmatprep.subr.mxu1 %v199_v41  ;;  %v178_v59 = vld [vmem:[#allocation7 + $0x18] sm:$0xff]  ;;  %v177_v61 = vld [vmem:[#allocation7 + $0x10] sm:$0xff]  ;;  %v192_v62 = vld [vmem:[#allocation7 + $0x88] sm:$0xff] }
  0x3b   :  { %122 = vmatprep.subr.mxu0 %v69_v30  ;;  %341 = vmatpush3.msra.mxu1 %v183_v43  ;;  %v176_v63 = vld [vmem:[#allocation7 + $0x8] sm:$0xff]  ;;  %v191_v0 = vld [vmem:[#allocation7 + $0x80] sm:$0xff]  ;;  %v90_v5 = vld [vmem:[%s511_s2] sm:$0x3]  ;;  %v298_v30 = vand.u32 31, %v293_v25  ;;  %s468_s2 = smov [#allocation8]  }
  0x3c   :  { %123 = vmatpush1.msra.mxu0 %v68_v32  ;;  %342 = vmatprep.subr.mxu1 %v198_v45  ;;  %v175_v1 = vld [vmem:[#allocation7] sm:$0xff]  ;;  %v95_v7 = vrot.slane %v90_v5, %v94_v4  ;;  %v99_v8 = vrot.slane %v90_v5, %v98_v6  ;;  %s316_s7 = sshll.u32 %s468_s2, 4  ;;  %s317_s7 = int_to_ptr.vmem [resolvable:$true] %s316_s7 }
  0x3d   :  { %124 = vmatprep.subr.mxu0 %v67_v34  ;;  %343 = vmatpush3.msra.mxu1 %v182_v47  ;;  %vm306_vm1 = vcmp.lt.s32.totalorder %v298_v30, 16  ;;  %s434_s8 = scalar_lea.vmem %s317_s7, 128  ;;  %p439_p2 = scmp.lt.s32.totalorder %s317_s7, %s317_s7 }
  0x3e   :  { %125 = vmatpush1.msra.mxu0 %v66_v36  ;;  %344 = vmatprep.subr.mxu1 %v197_v49  ;;  %p435_p1 = scmp.ne.s32.totalorder %s317_s7, %s434_s8  ;;  %p440_p3 = scmp.lt.s32.totalorder %s434_s8, %s434_s8 }
  0x3f   :  { %126 = vmatprep.subr.mxu0 %v65_v38  ;;  %345 = vmatpush3.msra.mxu1 %v181_v51 }
  0x40   :  { %127 = vmatpush1.msra.mxu0 %v64_v40  ;;  %346 = vmatprep.subr.mxu1 %v196_v53  ;;  %p441_p4 = por %p440_p3, %p439_p2 }
  0x41   :  { %128 = vmatprep.subr.mxu0 %v63_v42  ;;  %347 = vmatpush3.msra.mxu1 %v180_v55 }
  0x42   :  { %129 = vmatpush1.msra.mxu0 %v62_v44  ;;  %348 = vmatprep.subr.mxu1 %v195_v56  ;;  %p442_p5 = pnand %p441_p4, %p435_p1 }
  0x43   :  { %130 = vmatprep.subr.mxu0 %v61_v46  ;;  %349 = vmatpush3.msra.mxu1 %v179_v57 }
  0x44   :  { %131 = vmatpush1.msra.mxu0 %v60_v48  ;;  %350 = vmatprep.subr.mxu1 %v194_v58 }
  0x45   :  { %132 = vmatprep.subr.mxu0 %v59_v50  ;;  %351 = vmatpush3.msra.mxu1 %v178_v59 }
  0x46   :  { %133 = vmatpush1.msra.mxu0 %v58_v52  ;;  %352 = vmatprep.subr.mxu1 %v193_v60 }
  0x47   :  { %167 = vmatmul.mubr.f32.vlgmr.msra.gmra.mxu0 %v57_v54  ;;  %353 = vmatpush3.msra.mxu1 %v177_v61 }
  0x48   :  { %354 = vmatprep.subr.mxu1 %v192_v62 }
  0x49   :  { %355 = vmatpush3.msra.mxu1 %v176_v63 }
  0x4a   :  { %356 = vmatprep.subr.mxu1 %v191_v0 }
  0x4b   :  { %357 = vmatpush3.msra.mxu1 %v175_v1 }
 0x107   :  { %v168_v9 = vpop.f32.mrf.mxu0 }
 0x108   :  { %v169_v10 = vadd.f32 %v168_v9, %v95_v7 }
 0x109   :  { %v170_v11 = vpop.f32.mrf.mxu0 }
 0x10a   :  { %v171_v12 = vadd.f32 %v170_v11, %v99_v8  ;;  %v173_v14 = vmax.f32 %v169_v10, 0.0 }
 0x10c   :  { %v174_v13 = vmax.f32 %v171_v12, 0.0 }
 0x10e   :  { %271 = vmatprep.mubr.f32.mxu1 %v174_v13 }
 0x10f   :  { %272 = vmatmul.mubr.f32.vlgmr.msra.gmra.mxu1 %v173_v14 }
 0x1cf   :  { %v358_v15 = vpop.f32.mrf.mxu1 }
 0x1d1   :  { %v359_v16 = vpop.f32.mrf.mxu1 }
 0x1d2   :  { %v360_v17 = vadd.f32 %v359_v16, %v358_v15 }
 0x1d4   :  { %v278_v18 = vand.u32 2147483647, %v360_v17  ;;  %v277_v31 = vmax.f32 %v360_v17, 0.0 }
 0x1d6   :  { %v279_v19 = vsub.f32 0.0, %v278_v18 }
 0x1d8   :  { %v280_v20 = vmul.f32 1.442695, %v279_v19 }
 0x1da   :  { %370 = vpow2.f32 %v280_v20 }
 0x1e7   :  { %v371_v21 = vpop.eup %370 }
 0x1e8   :  { %v282_v22 = vadd.f32 1.0, %v371_v21  ;;  %v285_v23 = vmul.f32 -0.5, %v371_v21  ;;  %v288_v26 = vand.u32 2147483647, %v371_v21 }
 0x1ea   :  { %372 = vlog2.f32 %v282_v22  ;;  %v286_v24 = vadd.f32 1.0, %v285_v23  ;;  %vm289_vm0 = vcmp.lt.f32.partialorder %v288_v26, 0.0004427343 }
 0x1ec   :  { %v287_v29 = vmul.f32 %v371_v21, %v286_v24 }
 0x1f7   :  { %v373_v27 = vpop.eup %372 }
 0x1f8   :  { %v284_v28 = vmul.f32 0.6931472, %v373_v27 }
 0x1fa   :  { %v290_v32 = vsel %vm289_vm0, %v287_v29, %v284_v28 }
 0x1fb   :  { %v291_v33 = vadd.f32 %v290_v32, %v277_v31 }
 0x1fd   :  { %v307_v34 = vadd.f32 0.0001, %v291_v33 }
 0x1ff   :  { %v308_v35 = vsel %vm306_vm1, %v360_v17, %v307_v34 }
 0x200   :  { %309 = vst [vmem:[#allocation8] sm:$0xff] %v308_v35 }
 0x201   :  { %445 = shalt.err (!%p442_p5)
}
 0x202   :  { %319 = dma.vmem_to_hbm [thread:$0]  %s317_s7, 128, %s513_s4, [#allocation4]  }
 0x203   :  { %458 = dma.done.wait [#allocation4], 128  }
 0x204   :  { %459 = vsyncadd [#allocation4], 4294967168 }
 0x205   :  { %323 = vsyncpa [#allocation3], 1 }
 0x206   :  { %324 = vsyncpa [#allocation6], 1 }
 0x207   :  { %325 = vsyncpa [#allocation4], 1 }

</bundles_post_ra>
